<compile_context>
chip_gen: v5e
topology: v5e:2x2
jax: 0.10.0
libtpu: 0.0.40
codegen_flags: <defaults>
</compile_context>

<pallas_src>
import functools

import jax
import jax.numpy as jnp
from jax import lax
from jax.experimental import pallas as pl
from jax.experimental.pallas import tpu as pltpu

COMPUTE_DTYPE = jnp.bfloat16      # MXU operand dtype (accumulation stays f32)


def bisenet_output_kernel(x_ref, w1_ref, b1_ref, w2_ref, b2_ref, out_ref, *, row_tile):
    """One (batch, row-tile) grid step.

    x_ref  : (1, H+2, W+2, Cin)  padded channels-last image (bf16); block index is
                                 constant along the row-tile axis -> DMA'd once / image
    w1_ref : (3, 3*Cin, Cmid)    3x3 taps, dx stacked into K, eval-BN scale folded (bf16)
    b1_ref : (1, Cmid)           folded BN bias (f32)
    w2_ref : (Ncls, Cmid)        1x1 conv_out weight, channels-first (bf16)
    b2_ref : (Ncls, 1)           conv_out bias (f32)
    out_ref: (1, Ncls, TH*W)     logits, channels-first, flattened spatial on lanes
    """
    th = row_tile
    wpad = x_ref.shape[2]
    cin = x_ref.shape[3]
    w = wpad - 2
    s = th * w

    ti = pl.program_id(1)
    row0 = pl.multiple_of(ti * th, th)

    # Haloed row window of the VMEM-resident padded image (pure VMEM load, no DMA).
    x = x_ref[0, pl.ds(row0, th + 2), :, :]                    # (TH+2, W+2, Cin)

    # Stack the 3 dx taps along channels ONCE -> contraction width K = 3*Cin.
    x_dx = jnp.concatenate(
        [x[:, 0:w, :], x[:, 1:w + 1, :], x[:, 2:w + 2, :]], axis=-1)   # (TH+2, W, 3Cin)
    xf = x_dx.reshape((th + 2) * w, 3 * cin)   # row offset dy*W selects the dy-shifted slab

    # 3x3 conv = 3 stacked-K bf16 MXU matmuls, contiguous f32 accumulation chain.
    acc = jnp.dot(xf[0:s], w1_ref[0], preferred_element_type=jnp.float32)
    acc += jnp.dot(xf[w:w + s], w1_ref[1], preferred_element_type=jnp.float32)
    acc += jnp.dot(xf[2 * w:2 * w + s], w1_ref[2], preferred_element_type=jnp.float32)

    # Folded eval-BN bias + ReLU (f32 epilogue).
    feat = jnp.maximum(acc + b1_ref[...], 0.0)                 # (S, Cmid) f32

    # 1x1 conv_out emitted channels-first directly from the MXU (no logits.T):
    #   (Ncls, Cmid) x (S, Cmid)^T -> (Ncls, S)
    logits = lax.dot_general(
        w2_ref[...], feat.astype(w2_ref.dtype),
        dimension_numbers=(((1,), (1,)), ((), ())),
        preferred_element_type=jnp.float32)
    out_ref[0] = (logits + b2_ref[...]).astype(out_ref.dtype)  # (Ncls, S), lane-dense


def _pick_row_tile(h, w, max_spatial=2048):
    """Largest divisor rt of H with a lane-dense flattened tile (rt*W % 128 == 0) that
    is not too large, preferring >= 2 tiles so the grid feeds both v7x TensorCores."""
    cands = [d for d in range(1, h + 1) if h % d == 0 and (d * w) % 128 == 0]
    if not cands:
        return h                   # fall back to one full (possibly masked) tile
    good = [d for d in cands if d * w <= max_spatial and d < h]
    return max(good) if good else min(cands)


def _vmem_limit_bytes(in_block, out_block, weights, scratch):
    need = 2 * in_block + 2 * out_block + weights + 2 * scratch + (4 << 20)
    need = max(need, 32 << 20)
    try:   # generation-aware cap: ~45% of physical VMEM (v7x ~28 MiB, v5e/v6e ~57 MiB)
        cap = int(pltpu.get_tpu_info().vmem_capacity_bytes * 0.45)
    except Exception:
        cap = 100 << 20
    return int(min(need, cap))


@functools.partial(jax.jit, static_argnames=("up_factor", "row_tile"))
def bisenet_output(x, params, up_factor, row_tile=None):
    """x: (N, Cin, H, W) NCHW.  Returns (N, n_classes, H*up, W*up) NCHW."""
    w1, b1, w2, b2 = params
    n, cin, h, w = x.shape
    assert w1.shape[0] == 3 and w1.shape[1] == 3 * cin
    cmid = w1.shape[2]
    ncls = w2.shape[0]
    out_dtype = x.dtype

    if row_tile is None:
        row_tile = _pick_row_tile(h, w)
    assert h % row_tile == 0, "row_tile must divide H"
    assert (row_tile * w) % 128 == 0 or row_tile == h, \
        "flattened spatial tile should be a multiple of 128 for lane-dense stores"
    t = h // row_tile

    # NCHW -> channels-last + zero-pad (conv padding=1) + bf16 cast: one fused XLA pass.
    # TODO(synk): this pass disappears if the backbone emits channels-last features.
    xt = jnp.transpose(x, (0, 2, 3, 1)).astype(COMPUTE_DTYPE)
    xp = jnp.pad(xt, ((0, 0), (1, 1), (1, 1), (0, 0)))          # (N, H+2, W+2, Cin)

    itm = jnp.dtype(COMPUTE_DTYPE).itemsize
    osz = jnp.dtype(out_dtype).itemsize
    in_block = (h + 2) * (w + 2) * cin * itm
    out_block = ncls * row_tile * w * osz
    weights = (w1.size + w2.size) * itm + (b1.size + b2.size) * 4
    scratch = (row_tile * w * (3 * cin * itm + 3 * cmid * 4 + ncls * 4)
               + 2 * (row_tile + 2) * (w + 2) * cin * itm)
    vmem_limit = _vmem_limit_bytes(in_block, out_block, weights, scratch)

    cost = pl.CostEstimate(
        flops=2 * n * h * w * (9 * cin * cmid + cmid * ncls),
        transcendentals=0,
        bytes_accessed=int(xp.size * itm + weights + n * ncls * h * w * osz))

    logits = pl.pallas_call(
        functools.partial(bisenet_output_kernel, row_tile=row_tile),
        out_shape=jax.ShapeDtypeStruct((n, ncls, h * w), out_dtype),
        grid=(n, t),
        in_specs=[
            # Full padded image per batch element; index constant along ti -> fetched once.
            pl.BlockSpec((1, h + 2, w + 2, cin), lambda ni, ti: (ni, 0, 0, 0)),
            # Weights/biases: constant index maps -> VMEM-resident across the whole grid.
            pl.BlockSpec((3, 3 * cin, cmid), lambda ni, ti: (0, 0, 0)),
            pl.BlockSpec((1, cmid), lambda ni, ti: (0, 0)),
            pl.BlockSpec((ncls, cmid), lambda ni, ti: (0, 0)),
            pl.BlockSpec((ncls, 1), lambda ni, ti: (0, 0)),
        ],
        out_specs=pl.BlockSpec((1, ncls, row_tile * w), lambda ni, ti: (ni, 0, ti)),
        compiler_params=pltpu.CompilerParams(
            dimension_semantics=("parallel", "parallel"),
            vmem_limit_bytes=vmem_limit),
        cost_estimate=cost,
    )(xp, w1, b1, w2, b2)

    logits = logits.reshape(n, ncls, h, w)          # free: already NCHW-ordered

    # nn.Upsample(scale_factor=up_factor), default mode='nearest': pure replication.
    up = jnp.broadcast_to(logits[:, :, :, None, :, None],
                          (n, ncls, h, up_factor, w, up_factor))
    return up.reshape(n, ncls, h * up_factor, w * up_factor)


def make_params(key, in_chan, mid_chan, n_classes):
    """Synthetic parameters in the PyTorch layout (kaiming_normal_ a=1 -> std=1/sqrt(fan_in))."""
    ks = jax.random.split(key, 7)
    w_conv = jax.random.normal(ks[0], (mid_chan, in_chan, 3, 3), jnp.float32) \
        / jnp.sqrt(9.0 * in_chan)
    gamma = 1.0 + 0.1 * jax.random.normal(ks[1], (mid_chan,), jnp.float32)
    beta = 0.1 * jax.random.normal(ks[2], (mid_chan,), jnp.float32)
    rmean = 0.1 * jax.random.normal(ks[3], (mid_chan,), jnp.float32)
    rvar = jnp.abs(1.0 + 0.1 * jax.random.normal(ks[4], (mid_chan,), jnp.float32))
    w_out = jax.random.normal(ks[5], (n_classes, mid_chan, 1, 1), jnp.float32) \
        / jnp.sqrt(float(mid_chan))
    # PyTorch init_weight() zeros the conv_out bias; use a nonzero one so the
    # bias-add path is actually exercised (semantics identical).
    b_out = 0.1 * jax.random.normal(ks[6], (n_classes,), jnp.float32)
    return dict(w_conv=w_conv, gamma=gamma, beta=beta, rmean=rmean, rvar=rvar,
                w_out=w_out, b_out=b_out)


def fold_params(p, eps=1e-5):
    """Fold eval-mode BN into the 3x3 conv and re-layout weights for the kernel."""
    s1 = p['gamma'] / jnp.sqrt(p['rvar'] + eps)                 # (Cmid,)
    b1 = p['beta'] - p['rmean'] * s1                            # (Cmid,)
    cmid, cin = p['w_conv'].shape[:2]
    # (Cmid, Cin, 3, 3) -> (dy, dx, Cin, Cmid); BN scale folded; dx stacked into K.
    w1 = jnp.transpose(p['w_conv'], (2, 3, 1, 0)) * s1[None, None, None, :]
    w1 = w1.reshape(3, 3 * cin, cmid).astype(COMPUTE_DTYPE)     # (3, 3*Cin, Cmid)
    w2 = p['w_out'][:, :, 0, 0].astype(COMPUTE_DTYPE)           # (Ncls, Cmid) channels-first
    return (w1, b1.reshape(1, cmid).astype(jnp.float32),
            w2, p['b_out'].reshape(-1, 1).astype(jnp.float32))


def reference(x, p, up_factor, eps=1e-5):
    """Pure-JAX/XLA f32 reference of the same forward (NCHW, unfolded BN)."""
    y = lax.conv_general_dilated(x, p['w_conv'], (1, 1), ((1, 1), (1, 1)),
                                 dimension_numbers=('NCHW', 'OIHW', 'NCHW'))
    s = p['gamma'] / jnp.sqrt(p['rvar'] + eps)
    y = y * s[None, :, None, None] + (p['beta'] - p['rmean'] * s)[None, :, None, None]
    y = jnp.maximum(y, 0.0)
    y = lax.conv_general_dilated(y, p['w_out'], (1, 1), ((0, 0), (0, 0)),
                                 dimension_numbers=('NCHW', 'OIHW', 'NCHW'))
    y = y + p['b_out'][None, :, None, None]
    n, c, h, w = y.shape
    y = jnp.broadcast_to(y[:, :, :, None, :, None], (n, c, h, up_factor, w, up_factor))
    return y.reshape(n, c, h * up_factor, w * up_factor)


if __name__ == "__main__":
    key = jax.random.PRNGKey(0)
    kp, kx = jax.random.split(key)

    N, in_chan, mid_chan, n_classes = 2, 16, 32, 8
    H = W = 16
    up_factor = 2

    torch_params = make_params(kp, in_chan, mid_chan, n_classes)
    kernel_params = fold_params(torch_params)
    x = jax.random.normal(kx, (N, in_chan, H, W), jnp.float32)

    # row_tile=8 -> grid (2, 2) = 4 parallel steps; each out block is (1, 8, 128).
    out = bisenet_output(x, kernel_params, up_factor=up_factor, row_tile=8)
    out = jax.block_until_ready(out)

    ref = reference(x, torch_params, up_factor)
    assert out.shape == (N, n_classes, H * up_factor, W * up_factor)
    max_err = float(jnp.max(jnp.abs(out - ref)))
    # bf16 matmul operands (f32 accumulation) -> looser tolerance than pure f32.
    assert jnp.allclose(out, ref, atol=5e-2, rtol=5e-2), f"max abs err {max_err}"

    print("KERNEL_OK")
</pallas_src>

<mosaic_0001>
module attributes {stable_mosaic.version = 11 : i64} {
  func.func @bisenet_output_kernel(%arg0: i32, %arg1: i32, %arg2: memref<1x18x18x16xbf16, #tpu.memory_space<vmem>>, %arg3: memref<3x48x32xbf16, #tpu.memory_space<vmem>>, %arg4: memref<1x32xf32, #tpu.memory_space<vmem>>, %arg5: memref<8x32xbf16, #tpu.memory_space<vmem>>, %arg6: memref<8x1xf32, #tpu.memory_space<vmem>>, %arg7: memref<1x8x128xf32, #tpu.memory_space<vmem>>) attributes {dimension_semantics = [#tpu.dimension_semantics<parallel>, #tpu.dimension_semantics<parallel>], iteration_bounds = array<i64: 2, 2>, scalar_prefetch = 0 : i64, scratch_operands = 0 : i64, tpu.core_type = #tpu.core_type<tc>, window_params = [{transform_indices = @transform_0, window_bounds = array<i64: 1, 18, 18, 16>}, {pipeline_mode = #tpu.pipeline_mode<synchronous>, transform_indices = @transform_1, window_bounds = array<i64: 3, 48, 32>}, {pipeline_mode = #tpu.pipeline_mode<synchronous>, transform_indices = @transform_2, window_bounds = array<i64: 1, 32>}, {pipeline_mode = #tpu.pipeline_mode<synchronous>, transform_indices = @transform_3, window_bounds = array<i64: 8, 32>}, {pipeline_mode = #tpu.pipeline_mode<synchronous>, transform_indices = @transform_4, window_bounds = array<i64: 8, 1>}, {transform_indices = @transform_5, window_bounds = array<i64: 1, 8, 128>}]} {
    %c8_i32 = arith.constant 8 : i32
    %0 = arith.muli %arg1, %c8_i32 : i32
    %1 = tpu.assume_multiple %0, 8 : i32
    %c0 = arith.constant 0 : index
    %2 = arith.index_cast %1 : i32 to index
    %c0_0 = arith.constant 0 : index
    %c0_1 = arith.constant 0 : index
    %3 = vector.load %arg2[%c0, %2, %c0_0, %c0_1] : memref<1x18x18x16xbf16, #tpu.memory_space<vmem>>, vector<1x10x18x16xbf16>
    %4 = vector.shape_cast %3 : vector<1x10x18x16xbf16> to vector<10x18x16xbf16>
    %5 = vector.extract_strided_slice %4 {offsets = [0, 0, 0], sizes = [10, 16, 16], strides = [1, 1, 1]} : vector<10x18x16xbf16> to vector<10x16x16xbf16>
    %6 = vector.extract_strided_slice %4 {offsets = [0, 1, 0], sizes = [10, 16, 16], strides = [1, 1, 1]} : vector<10x18x16xbf16> to vector<10x16x16xbf16>
    %7 = vector.extract_strided_slice %4 {offsets = [0, 2, 0], sizes = [10, 16, 16], strides = [1, 1, 1]} : vector<10x18x16xbf16> to vector<10x16x16xbf16>
    %8 = tpu.concatenate %5, %6, %7 in 2 : vector<10x16x16xbf16>, vector<10x16x16xbf16>, vector<10x16x16xbf16> -> vector<10x16x48xbf16>
    %9 = vector.shape_cast %8 : vector<10x16x48xbf16> to vector<160x48xbf16>
    %10 = vector.extract_strided_slice %9 {offsets = [0, 0], sizes = [128, 48], strides = [1, 1]} : vector<160x48xbf16> to vector<128x48xbf16>
    %c0_2 = arith.constant 0 : index
    %c0_3 = arith.constant 0 : index
    %c0_4 = arith.constant 0 : index
    %11 = vector.load %arg3[%c0_2, %c0_3, %c0_4] : memref<3x48x32xbf16, #tpu.memory_space<vmem>>, vector<1x48x32xbf16>
    %12 = vector.shape_cast %11 : vector<1x48x32xbf16> to vector<48x32xbf16>
    %cst = arith.constant dense<0.000000e+00> : vector<128x32xf32>
    %13 = tpu.matmul %10, %12, %cst {dimension_numbers = #tpu.dot_dimension_numbers<[1], [0], [0], [1], [0, 0, 1, 1], [], []>} : vector<128x48xbf16>, vector<48x32xbf16>, vector<128x32xf32> -> vector<128x32xf32>
    %14 = vector.extract_strided_slice %9 {offsets = [16, 0], sizes = [128, 48], strides = [1, 1]} : vector<160x48xbf16> to vector<128x48xbf16>
    %c1 = arith.constant 1 : index
    %c0_5 = arith.constant 0 : index
    %c0_6 = arith.constant 0 : index
    %15 = vector.load %arg3[%c1, %c0_5, %c0_6] : memref<3x48x32xbf16, #tpu.memory_space<vmem>>, vector<1x48x32xbf16>
    %16 = vector.shape_cast %15 : vector<1x48x32xbf16> to vector<48x32xbf16>
    %cst_7 = arith.constant dense<0.000000e+00> : vector<128x32xf32>
    %17 = tpu.matmul %14, %16, %cst_7 {dimension_numbers = #tpu.dot_dimension_numbers<[1], [0], [0], [1], [0, 0, 1, 1], [], []>} : vector<128x48xbf16>, vector<48x32xbf16>, vector<128x32xf32> -> vector<128x32xf32>
    %18 = arith.addf %13, %17 : vector<128x32xf32>
    %19 = vector.extract_strided_slice %9 {offsets = [32, 0], sizes = [128, 48], strides = [1, 1]} : vector<160x48xbf16> to vector<128x48xbf16>
    %c2 = arith.constant 2 : index
    %c0_8 = arith.constant 0 : index
    %c0_9 = arith.constant 0 : index
    %20 = vector.load %arg3[%c2, %c0_8, %c0_9] : memref<3x48x32xbf16, #tpu.memory_space<vmem>>, vector<1x48x32xbf16>
    %21 = vector.shape_cast %20 : vector<1x48x32xbf16> to vector<48x32xbf16>
    %cst_10 = arith.constant dense<0.000000e+00> : vector<128x32xf32>
    %22 = tpu.matmul %19, %21, %cst_10 {dimension_numbers = #tpu.dot_dimension_numbers<[1], [0], [0], [1], [0, 0, 1, 1], [], []>} : vector<128x48xbf16>, vector<48x32xbf16>, vector<128x32xf32> -> vector<128x32xf32>
    %23 = arith.addf %18, %22 : vector<128x32xf32>
    %c0_11 = arith.constant 0 : index
    %c0_12 = arith.constant 0 : index
    %24 = vector.load %arg4[%c0_11, %c0_12] : memref<1x32xf32, #tpu.memory_space<vmem>>, vector<1x32xf32>
    %25 = vector.broadcast %24 : vector<1x32xf32> to vector<128x32xf32>
    %26 = arith.addf %23, %25 : vector<128x32xf32>
    %cst_13 = arith.constant 0.000000e+00 : f32
    %27 = vector.broadcast %cst_13 : f32 to vector<128x32xf32>
    %28 = arith.maximumf %26, %27 : vector<128x32xf32>
    %c0_14 = arith.constant 0 : index
    %c0_15 = arith.constant 0 : index
    %29 = vector.load %arg5[%c0_14, %c0_15] : memref<8x32xbf16, #tpu.memory_space<vmem>>, vector<8x32xbf16>
    %30 = arith.truncf %28 : vector<128x32xf32> to vector<128x32xbf16>
    %cst_16 = arith.constant dense<0.000000e+00> : vector<8x128xf32>
    %31 = tpu.matmul %29, %30, %cst_16 {dimension_numbers = #tpu.dot_dimension_numbers<[1], [1], [0], [0], [0, 0, 1, 0], [], []>} : vector<8x32xbf16>, vector<128x32xbf16>, vector<8x128xf32> -> vector<8x128xf32>
    %c0_17 = arith.constant 0 : index
    %c0_18 = arith.constant 0 : index
    %32 = vector.load %arg6[%c0_17, %c0_18] : memref<8x1xf32, #tpu.memory_space<vmem>>, vector<8x1xf32>
    %33 = vector.broadcast %32 : vector<8x1xf32> to vector<8x128xf32>
    %34 = arith.addf %31, %33 : vector<8x128xf32>
    %c0_19 = arith.constant 0 : index
    %c0_20 = arith.constant 0 : index
    %c0_21 = arith.constant 0 : index
    %35 = vector.load %arg7[%c0_19, %c0_20, %c0_21] : memref<1x8x128xf32, #tpu.memory_space<vmem>>, vector<1x8x128xf32>
    %36 = vector.shape_cast %35 : vector<1x8x128xf32> to vector<8x128xf32>
    %37 = vector.shape_cast %34 : vector<8x128xf32> to vector<1x8x128xf32>
    tpu.vector_store %arg7[%c0_19, %c0_20, %c0_21], %37 {strides = array<i32>} : memref<1x8x128xf32, #tpu.memory_space<vmem>>, vector<1x8x128xf32>,
    return
  }
  func.func @transform_0(%arg0: i32, %arg1: i32) -> (i32, i32, i32, i32) {
    %c0_i32 = arith.constant 0 : i32
    %c0_i32_0 = arith.constant 0 : i32
    %c0_i32_1 = arith.constant 0 : i32
    %c0_i32_2 = arith.constant 0 : i32
    return %arg0, %c0_i32, %c0_i32_0, %c0_i32_1 : i32, i32, i32, i32
  }
  func.func @transform_1(%arg0: i32, %arg1: i32) -> (i32, i32, i32) {
    %c0_i32 = arith.constant 0 : i32
    %c0_i32_0 = arith.constant 0 : i32
    %c0_i32_1 = arith.constant 0 : i32
    %c0_i32_2 = arith.constant 0 : i32
    return %c0_i32, %c0_i32_0, %c0_i32_1 : i32, i32, i32
  }
  func.func @transform_2(%arg0: i32, %arg1: i32) -> (i32, i32) {
    %c0_i32 = arith.constant 0 : i32
    %c0_i32_0 = arith.constant 0 : i32
    %c0_i32_1 = arith.constant 0 : i32
    return %c0_i32, %c0_i32_0 : i32, i32
  }
  func.func @transform_3(%arg0: i32, %arg1: i32) -> (i32, i32) {
    %c0_i32 = arith.constant 0 : i32
    %c0_i32_0 = arith.constant 0 : i32
    %c0_i32_1 = arith.constant 0 : i32
    return %c0_i32, %c0_i32_0 : i32, i32
  }
  func.func @transform_4(%arg0: i32, %arg1: i32) -> (i32, i32) {
    %c0_i32 = arith.constant 0 : i32
    %c0_i32_0 = arith.constant 0 : i32
    %c0_i32_1 = arith.constant 0 : i32
    return %c0_i32, %c0_i32_0 : i32, i32
  }
  func.func @transform_5(%arg0: i32, %arg1: i32) -> (i32, i32, i32) {
    %c0_i32 = arith.constant 0 : i32
    %c0_i32_0 = arith.constant 0 : i32
    return %arg0, %c0_i32, %arg1 : i32, i32, i32
  }
}

</mosaic_0001>

<bundles_post_ra>
// kernel: bisenet_output.1
= control target key start
LH: loop header
LB: loop body
LE: loop exit
PB: predicated region body
PF: predicated region fallthrough
CT: control target
= control target key end

     0   :  { %s1292_s18 = smov 0   ;;  %s1294_s19 = smov 0   ;;  %s1593_s0 = inlined_call_operand.vmem [shape: bf16[2,18,18,16], index: 0, kind: input, shape index: {}]   ;;  %s1594_s1 = inlined_call_operand.vmem [shape: bf16[3,48,32], index: 1, kind: input, shape index: {}]   ;;  %s1595_s2 = inlined_call_operand.vmem [shape: f32[1,32], index: 2, kind: input, shape index: {}]   ;;  %s1596_s3 = inlined_call_operand.vmem [shape: bf16[8,32], index: 3, kind: input, shape index: {}]   ;;  %s1597_s4 = inlined_call_operand.vmem [shape: f32[8,1], index: 4, kind: input, shape index: {}]   ;;  %s1598_s5 = inlined_call_operand.vmem [shape: f32[2,8,256], index: 5, kind: output, shape index: {}]  }
   0x1   :  { %s1296_s20 = smov 0   ;;  %s1298_s21 = smov 0  }
   0x2   :  { %s1300_s22 = smov 0  }
   0x3 LB: > { %s24_s23 = sadd.s32 1, %s1249_s20  ;;  %s27_s24 = sadd.s32 1, %s1253_s21  ;;  %s1257_s22 = sphi %s1300_s22, %s15_s22   ;;  %s1253_s21 = sphi %s1298_s21, %s1602_s21   ;;  %s1249_s20 = sphi %s1296_s20, %s1601_s20   ;;  %s1245_s19 = sphi %s1294_s19, %s1600_s19   ;;  %s1241_s18 = sphi %s1292_s18, %s1599_s18  }
   0x4   : > { %p25_p0 = scmp.ge.s32.totalorder %s24_s23, 2  ;;  %p1030_p1 = scmp.ge.s32.totalorder %s1257_s22, 1 }
   0x5   : > { %p201_p2 = scmp.lt.s32.totalorder %s1257_s22, 5 }
   0x6   : > { %s1604_s23 = smov (%p25_p0, %s24_s23), 0  ;;  %s1606_s24 = smov (!%p25_p0, %s27_s24), %s1253_s21 }
   0x7   : > { %p202_p3 = pnand %p1030_p1, %p201_p2  ;;  %p29_p4 = scmp.ge.s32.totalorder %s1606_s24, 2 }
   0x8   : > { %p232_p5 = scmp.lt.s32.totalorder (!%p202_p3), %s1245_s19, 1  ;;  %s1152_s25 = smul.u32 (!%p202_p3), 96, %s1241_s18 }
   0x9   : > { %s1608_s24 = smov (%p29_p4, %s1606_s24), 0  ;;  %205 = sbr.rel (%p202_p3) target bundleno = 617 (0x269), region = 40 }
   0xa   : > { %s1259_s6 = smov (!%p202_p3), 16   ;;  %s1260_s7 = smov (!%p202_p3), 32  }
   0xb   : > { %p239_p6 = scmp.lt.s32.totalorder (!%p202_p3), %s1241_s18, 1 }
   0xe   : > { %s1610_s19 = smov (!%p232_p5, %s1245_s19), 1  ;;  %vm360_vm0 = vsmask.f32 7424  ;;  %vm501_vm1 = vcmask 1046528   ;;  %vm552_vm2 = vcmask 130048   ;;  %vm573_vm3 = vcmask 261120  }
   0xf   : > { %s1172_s26 = smul.u32 216, %s1610_s19  ;;  %vm625_vm4 = vcmask 392192   ;;  %s1612_s18 = smov (!%p239_p6, %s1241_s18), 1 }
  0x10   : > { %s1032_s14 = sshll.u32 %s1610_s19, 1 }
  0x11   : > { %s236_s29 = scalar_lea.vmem %s1593_s0, %s1172_s26  ;;  %s242_s15 = sadd.s32 %s1032_s14, %s1612_s18 }
  0x12   : > { %s1331_s30 = scalar_lea.vmem %s236_s29, %s1152_s25  ;;  %s1033_s16 = sshll.u32 %s242_s15, 3 }
  0x13   : > { %v1334_v0 = vld [vmem:[%s1331_s30 + $0x18] sm:$0xff]  ;;  %v258_v1 = vld [vmem:[%s1331_s30 + $0x20] sm:$0x1]  ;;  %v252_v4 = vld [vmem:[%s1331_s30 + $0x8] sm:$0x1]  ;;  %s244_s26 = scalar_lea.vmem %s1598_s5, %s1033_s16 }
  0x14   : > { %v1338_v2 = vld [vmem:[%s1331_s30] sm:$0xff]  ;;  %v342_v3 = vunpack.c.l.b16 %v258_v1  ;;  %v1342_v5 = vld [vmem:[%s1331_s30 + $0xc] sm:$0xff]  ;;  %v255_v6 = vld [vmem:[%s1331_s30 + $0x14] sm:$0x1]  ;;  %v386_v7 = vshrl.u32 %v1334_v0, 16  ;;  %v388_v8 = vshll.u32 %v1334_v0, 16  ;;  %v340_v9 = vunpack.c.l.b16 %v252_v4 }
  0x15   : > { %v362_v11 = vshrl.u32 %v1338_v2, 16  ;;  %v364_v12 = vshll.u32 %v1338_v2, 16  ;;  %v341_v13 = vunpack.c.l.b16 %v255_v6  ;;  %v261_v14 = vld [vmem:[%s1331_s30 + $0x2c] sm:$0x1]  ;;  %v376_v17 = vshll.u32 %v1342_v5, 16  ;;  %v1352_v23 = vld [vmem:[%s1331_s30 + $0x24] sm:$0xff] }
  0x16   : > { %v352_v10 = vpack.c.b16 %v342_v3, %v342_v3  ;;  %v390_v15 = vrot.slane %v388_v8, 1  ;;  %v350_v16 = vpack.c.b16 %v340_v9, %v340_v9  ;;  %v343_v24 = vunpack.c.l.b16 %v261_v14  ;;  %v264_v36 = vld [vmem:[%s1331_s30 + $0x38] sm:$0x1]  ;;  %v1365_v43 = vld [vmem:[%s1331_s30 + $0x30] sm:$0xff]  ;;  %v267_v45 = vld [vmem:[%s1331_s30 + $0x44] sm:$0x1] }
  0x17   : > { %v366_v19 = vrot.slane %v364_v12, 1  ;;  %v351_v20 = vpack.c.b16 %v341_v13, %v341_v13  ;;  %v374_v28 = vshrl.u32 %v1342_v5, 16  ;;  %v378_v29 = vrot.slane %v376_v17, 1  ;;  %v1375_v54 = vld [vmem:[%s1331_s30 + $0x3c] sm:$0xff]  ;;  %v270_v59 = vld [vmem:[%s1331_s30 + $0x50] sm:$0x1] }
  0x18   : > { %v393_v18 = vshll.u32 %v352_v10, 16  ;;  %v391_v21 = vor.u32 %v390_v15, %v386_v7  ;;  %v369_v22 = vshll.u32 %v350_v16, 16  ;;  %v353_v33 = vpack.c.b16 %v343_v24, %v343_v24  ;;  %v1165_v1 = vld [vmem:[%s1594_s1 + $0x10] sm:$0xff]  ;;  %v1171_v3 = vld [vmem:[%s1594_s1 + $0x40] sm:$0xff]  ;;  %v1168_v9 = vld [vmem:[%s1594_s1 + $0x28] sm:$0xff] }
  0x19   : > { %v367_v26 = vor.u32 %v366_v19, %v362_v11  ;;  %v381_v30 = vshll.u32 %v351_v20, 16  ;;  %v400_v34 = vshll.u32 %v1352_v23, 16  ;;  %v502_v35 = vrot.slane %v1338_v2, 1  ;;  %716 = vmatpush.bf16.msra.mxu1 %v1165_v1  ;;  %792 = vmatpush.bf16.msra.mxu2 %v1171_v3  ;;  %v1398_v11 = vld [vmem:[%s1331_s30 + $0x48] sm:$0xff]  ;;  %v273_v24 = vld [vmem:[%s1331_s30 + $0x5c] sm:$0x1] }
  0x1a   : > { %v395_v25 = vrot.slane %v393_v18, 1  ;;  %v371_v27 = vrot.slane %v369_v22, 1  ;;  %v508_v37 = vrot.slane %v1334_v0, 1  ;;  %v509_v38 = vrot.slane %v352_v10, 1  ;;  %v1164_v10 = vld [vmem:[%s1594_s1 + $0x8] sm:$0xff]  ;;  %647 = vmatpush.bf16.msra.mxu0 %v1168_v9 }
  0x1b   : > { %v503_v39 = vrot.slane %v350_v16, 1  ;;  %v379_v40 = vor.u32 %v378_v29, %v374_v28  ;;  %v383_v41 = vrot.slane %v381_v30, 1  ;;  %v344_v44 = vunpack.c.l.b16 %v264_v36  ;;  %v1413_v30 = vld [vmem:[%s1331_s30 + $0x54] sm:$0xff] }
  0x1c   : > { %v396_v31 = vsel %vm360_vm0, %v391_v21, %v395_v25  ;;  %v372_v32 = vsel %vm360_vm0, %v367_v26, %v371_v27  ;;  %v398_v46 = vshrl.u32 %v1352_v23, 16  ;;  %v402_v47 = vrot.slane %v400_v34, 1  ;;  %v279_v9 = vld [vmem:[%s1331_s30 + $0x74] sm:$0x1] }
  0x1d   : > { %485 = vrot.lane.b32.xlu0 %v396_v31, %s1259_s6  ;;  %481 = vrot.lane.b32.xlu1 %v372_v32, %s1259_s6  ;;  %v504_v42 = vsel %vm501_vm1, %v502_v35, %v503_v39  ;;  %v405_v48 = vshll.u32 %v353_v33, 16  ;;  %v510_v49 = vsel %vm501_vm1, %v508_v37, %v509_v38  ;;  %v505_v50 = vrot.slane %v1342_v5, 1  ;;  %v276_v32 = vld [vmem:[%s1331_s30 + $0x68] sm:$0x1] }
  0x1e   : > { %532 = vrot.lane.b32.xlu2 %v504_v42, %s1260_s7  ;;  %v506_v51 = vrot.slane %v351_v20, 1  ;;  %v412_v52 = vshll.u32 %v1365_v43, 16  ;;  %v384_v53 = vsel %vm360_vm0, %v379_v40, %v383_v41  ;;  %v345_v55 = vunpack.c.l.b16 %v267_v45  ;;  %717 = vmatpush.bf16.msra.mxu1 %v1164_v10  ;;  %v1163_v20 = vld [vmem:[%s1594_s1] sm:$0xff]  ;;  %v1446_v10 = vld [vmem:[%s1331_s30 + $0x6c] sm:$0xff] }
  0x1f   : > { %v354_v56 = vpack.c.b16 %v344_v44, %v344_v44  ;;  %v403_v57 = vor.u32 %v402_v47, %v398_v46  ;;  %v407_v58 = vrot.slane %v405_v48, 1  ;;  %v410_v61 = vshrl.u32 %v1365_v43, 16  ;;  %v1423_v41 = vld [vmem:[%s1331_s30 + $0x60] sm:$0xff] }
  0x20   : > { %v507_v60 = vsel %vm501_vm1, %v505_v50, %v506_v51  ;;  %v414_v62 = vrot.slane %v412_v52, 1  ;;  %v511_v4 = vrot.slane %v1352_v23, 1  ;;  %v512_v6 = vrot.slane %v353_v33, 1 }
  0x21   : > { %v417_v63 = vshll.u32 %v354_v56, 16  ;;  %v355_v7 = vpack.c.b16 %v345_v55, %v345_v55  ;;  %v424_v8 = vshll.u32 %v1375_v54, 16  ;;  %v346_v12 = vunpack.c.l.b16 %v270_v59 }
  0x22   : > { %v408_v13 = vsel %vm360_vm0, %v403_v57, %v407_v58  ;;  %v415_v14 = vor.u32 %v414_v62, %v410_v61  ;;  %v513_v16 = vsel %vm501_vm1, %v511_v4, %v512_v6  ;;  %v422_v17 = vshrl.u32 %v1375_v54, 16  ;;  %718 = vmatpush.bf16.msra.mxu1 %v1163_v20 }
  0x23   : > { %v419_v15 = vrot.slane %v417_v63, 1  ;;  %v426_v18 = vrot.slane %v424_v8, 1  ;;  %v429_v19 = vshll.u32 %v355_v7, 16  ;;  %v356_v21 = vpack.c.b16 %v346_v12, %v346_v12 }
  0x24   : > { %v436_v22 = vshll.u32 %v1398_v11, 16  ;;  %v514_v25 = vrot.slane %v1365_v43, 1  ;;  %v515_v26 = vrot.slane %v354_v56, 1  ;;  %v347_v31 = vunpack.c.l.b16 %v273_v24 }
  0x25   : > { %536 = vrot.lane.b32.xlu0 %v510_v49, %s1260_s7  ;;  %483 = vrot.lane.b32.xlu1 %v384_v53, %s1259_s6  ;;  %v420_v27 = vsel %vm360_vm0, %v415_v14, %v419_v15  ;;  %v427_v28 = vor.u32 %v426_v18, %v422_v17  ;;  %v431_v29 = vrot.slane %v429_v19, 1  ;;  %v434_v33 = vshrl.u32 %v1398_v11, 16  ;;  %v1170_v18 = vld [vmem:[%s1594_s1 + $0x38] sm:$0xff]  ;;  %v1167_v19 = vld [vmem:[%s1594_s1 + $0x20] sm:$0xff] }
  0x26   : > { %534 = vrot.lane.b32.xlu2 %v507_v60, %s1260_s7  ;;  %v438_v34 = vrot.slane %v436_v22, 1  ;;  %v441_v35 = vshll.u32 %v356_v21, 16  ;;  %v516_v36 = vsel %vm501_vm1, %v514_v25, %v515_v26  ;;  %v517_v37 = vrot.slane %v1375_v54, 1  ;;  %793 = vmatpush.bf16.msra.mxu2 %v1170_v18  ;;  %v1169_v25 = vld [vmem:[%s1594_s1 + $0x30] sm:$0xff] }
  0x27   : > { %v518_v38 = vrot.slane %v355_v7, 1  ;;  %v448_v39 = vshll.u32 %v1413_v30, 16  ;;  %v432_v40 = vsel %vm360_vm0, %v427_v28, %v431_v29  ;;  %v348_v42 = vunpack.c.l.b16 %v276_v32  ;;  %648 = vmatpush.bf16.msra.mxu0 %v1167_v19 }
  0x28   : > { %v357_v44 = vpack.c.b16 %v347_v31, %v347_v31  ;;  %v439_v45 = vor.u32 %v438_v34, %v434_v33  ;;  %v443_v46 = vrot.slane %v441_v35, 1  ;;  %v446_v48 = vshrl.u32 %v1413_v30, 16 }
  0x29   : > { %v519_v47 = vsel %vm501_vm1, %v517_v37, %v518_v38  ;;  %v450_v49 = vrot.slane %v448_v39, 1  ;;  %v520_v51 = vrot.slane %v1398_v11, 1  ;;  %v521_v52 = vrot.slane %v356_v21, 1 }
  0x2a   : > { %v453_v50 = vshll.u32 %v357_v44, 16  ;;  %v358_v53 = vpack.c.b16 %v348_v42, %v348_v42  ;;  %v460_v55 = vshll.u32 %v1423_v41, 16  ;;  %v444_v56 = vsel %vm360_vm0, %v439_v45, %v443_v46  ;;  %794 = vmatpush.bf16.msra.mxu2 %v1169_v25 }
  0x2b   : > { %v451_v57 = vor.u32 %v450_v49, %v446_v48  ;;  %v522_v59 = vsel %vm501_vm1, %v520_v51, %v521_v52  ;;  %v458_v60 = vshrl.u32 %v1423_v41, 16  ;;  %v523_v63 = vrot.slane %v1413_v30, 1 }
  0x2c   : > { %v455_v58 = vrot.slane %v453_v50, 1  ;;  %v462_v61 = vrot.slane %v460_v55, 1  ;;  %v465_v62 = vshll.u32 %v358_v53, 16  ;;  %v524_v1 = vrot.slane %v357_v44, 1 }
  0x2d   : > { %487 = vrot.lane.b32.xlu0 %v408_v13, %s1259_s6  ;;  %538 = vrot.lane.b32.xlu1 %v513_v16, %s1260_s7  ;;  %v349_v12 = vunpack.c.l.b16 %v279_v9  ;;  %v472_v14 = vshll.u32 %v1446_v10, 16  ;;  %v470_v15 = vshrl.u32 %v1446_v10, 16  ;;  %v529_v22 = vrot.slane %v1446_v10, 1 }
  0x2e   : > { %489 = vrot.lane.b32.xlu2 %v420_v27, %s1259_s6  ;;  %v456_v3 = vsel %vm360_vm0, %v451_v57, %v455_v58  ;;  %v463_v4 = vor.u32 %v462_v61, %v458_v60  ;;  %v467_v6 = vrot.slane %v465_v62, 1  ;;  %v525_v7 = vsel %vm501_vm1, %v523_v63, %v524_v1  ;;  %v1166_v27 = vld [vmem:[%s1594_s1 + $0x18] sm:$0xff] }
  0x2f   : > { %v359_v13 = vpack.c.b16 %v349_v12, %v349_v12  ;;  %v474_v16 = vrot.slane %v472_v14, 1  ;;  %649 = vmatpush.bf16.msra.mxu0 %v1166_v27  ;;  %v526_v29 = vrot.slane %v1423_v41, 1  ;;  %v527_v31 = vrot.slane %v358_v53, 1 }
  0x30   : > { %v468_v8 = vsel %vm360_vm0, %v463_v4, %v467_v6 }
  0x31   : > { %v477_v17 = vshll.u32 %v359_v13, 16  ;;  %v475_v20 = vor.u32 %v474_v16, %v470_v15  ;;  %v530_v24 = vrot.slane %v359_v13, 1  ;;  %v528_v32 = vsel %vm501_vm1, %v526_v29, %v527_v31  ;;  %v1527_v16 = vld [vmem:[%s1595_s2] ss:$0 sm:$0xff] }
  0x33   : > { %v479_v21 = vrot.slane %v477_v17, 1  ;;  %v531_v28 = vsel %vm501_vm1, %v529_v22, %v530_v24 }
  0x35   : > { %540 = vrot.lane.b32.xlu0 %v516_v36, %s1260_s7  ;;  %491 = vrot.lane.b32.xlu1 %v432_v40, %s1259_s6  ;;  %v480_v26 = vsel %vm360_vm0, %v475_v20, %v479_v21 }
  0x36   : > { %542 = vrot.lane.b32.xlu2 %v519_v47, %s1260_s7 }
  0x3d   : > { %493 = vrot.lane.b32.xlu0 %v444_v56, %s1259_s6  ;;  %544 = vrot.lane.b32.xlu1 %v522_v59, %s1260_s7 }
  0x3e   : > { %495 = vrot.lane.b32.xlu2 %v456_v3, %s1259_s6 }
  0x45   : > { %546 = vrot.lane.b32.xlu0 %v525_v7, %s1260_s7  ;;  %497 = vrot.lane.b32.xlu1 %v468_v8, %s1259_s6 }
  0x46   : > { %548 = vrot.lane.b32.xlu2 %v528_v32, %s1260_s7 }
  0x4d   : > { %499 = vrot.lane.b32.xlu0 %v480_v26, %s1259_s6  ;;  %550 = vrot.lane.b32.xlu1 %v531_v28, %s1260_s7 }
  0x78   : > { %v533_v33 = vpop.permute.xlu2 %532 }
  0x80   : > { %v535_v40 = vpop.permute.xlu2 %534 }
  0x8f   : > { %v486_v34 = vpop.permute.xlu0 %485  ;;  %v482_v35 = vpop.permute.xlu1 %481 }
  0x90   : > { %v554_v36 = vsel %vm552_vm2, %v1338_v2, %v482_v35  ;;  %v558_v38 = vsel %vm552_vm2, %v1334_v0, %v486_v34 }
  0x91   : > { %v575_v37 = vsel %vm573_vm3, %v554_v36, %v533_v33 }
  0x92   : > { %1115 = vmatmul.msk.bf16.vlgmr.msra.gmra.mxu1 %vm625_vm4, %v575_v37 }
  0x97   : > { %v537_v39 = vpop.permute.xlu0 %536  ;;  %v484_v42 = vpop.permute.xlu1 %483 }
  0x98   : > { %v579_v44 = vsel %vm573_vm3, %v558_v38, %v537_v39  ;;  %v556_v45 = vsel %vm552_vm2, %v1342_v5, %v484_v42  ;;  %v490_v5 = vpop.permute.xlu2 %489 }
  0x99   : > { %1141 = vmatmul.msk.bf16.vlgmr.msra.gmra.mxu2 %vm625_vm4, %v579_v44  ;;  %v577_v46 = vsel %vm573_vm3, %v556_v45, %v535_v40  ;;  %v562_v49 = vsel %vm552_vm2, %v1365_v43, %v490_v5 }
  0x9a   : > { %1095 = vmatmul.msk.bf16.vlgmr.msra.gmra.mxu0 %vm625_vm4, %v577_v46 }
  0x9f   : > { %v488_v2 = vpop.permute.xlu0 %487  ;;  %v539_v47 = vpop.permute.xlu1 %538 }
  0xa0   : > { %v560_v0 = vsel %vm552_vm2, %v1352_v23, %v488_v2  ;;  %v543_v53 = vpop.permute.xlu2 %542 }
  0xa1   : > { %v581_v48 = vsel %vm573_vm3, %v560_v0, %v539_v47 }
  0xa2   : > { %1116 = vmatmul.msk.bf16.gmra.mxu1 %vm625_vm4, %v577_v46 }
  0xa7   : > { %v541_v50 = vpop.permute.xlu0 %540  ;;  %v492_v23 = vpop.permute.xlu1 %491 }
  0xa8   : > { %v583_v51 = vsel %vm573_vm3, %v562_v49, %v541_v50  ;;  %v564_v52 = vsel %vm552_vm2, %v1375_v54, %v492_v23  ;;  %v496_v54 = vpop.permute.xlu2 %495 }
  0xa9   : > { %1142 = vmatmul.msk.bf16.gmra.mxu2 %vm625_vm4, %v581_v48  ;;  %v585_v55 = vsel %vm573_vm3, %v564_v52, %v543_v53  ;;  %v568_v59 = vsel %vm552_vm2, %v1413_v30, %v496_v54 }
  0xaa   : > { %1096 = vmatmul.msk.bf16.gmra.mxu0 %vm625_vm4, %v579_v44 }
  0xaf   : > { %v494_v43 = vpop.permute.xlu0 %493  ;;  %v545_v57 = vpop.permute.xlu1 %544 }
  0xb0   : > { %v566_v56 = vsel %vm552_vm2, %v1398_v11, %v494_v43  ;;  %v549_v63 = vpop.permute.xlu2 %548 }
  0xb1   : > { %v587_v58 = vsel %vm573_vm3, %v566_v56, %v545_v57 }
  0xb2   : > { %1117 = vmatmul.msk.bf16.gmra.mxu1 %vm625_vm4, %v579_v44 }
  0xb7   : > { %v547_v60 = vpop.permute.xlu0 %546  ;;  %v498_v11 = vpop.permute.xlu1 %497 }
  0xb8   : > { %v589_v61 = vsel %vm573_vm3, %v568_v59, %v547_v60  ;;  %v570_v62 = vsel %vm552_vm2, %v1423_v41, %v498_v11 }
  0xb9   : > { %1143 = vmatmul.msk.bf16.gmra.mxu2 %vm625_vm4, %v583_v51  ;;  %v591_v1 = vsel %vm573_vm3, %v570_v62, %v549_v63 }
  0xba   : > { %1097 = vmatmul.msk.bf16.gmra.mxu0 %vm625_vm4, %v581_v48 }
  0xbf   : > { %v500_v30 = vpop.permute.xlu0 %499  ;;  %v551_v4 = vpop.permute.xlu1 %550 }
  0xc0   : > { %v572_v3 = vsel %vm552_vm2, %v1446_v10, %v500_v30 }
  0xc1   : > { %v593_v6 = vsel %vm573_vm3, %v572_v3, %v551_v4 }
  0xc2   : > { %1118 = vmatmul.msk.bf16.gmra.mxu1 %vm625_vm4, %v581_v48 }
  0xc9   : > { %1144 = vmatmul.msk.bf16.gmra.mxu2 %vm625_vm4, %v585_v55 }
  0xca   : > { %1098 = vmatmul.msk.bf16.gmra.mxu0 %vm625_vm4, %v583_v51 }
  0xd2   : > { %1119 = vmatmul.msk.bf16.gmra.mxu1 %vm625_vm4, %v583_v51 }
  0xd9   : > { %1145 = vmatmul.msk.bf16.gmra.mxu2 %vm625_vm4, %v587_v58 }
  0xda   : > { %1099 = vmatmul.msk.bf16.gmra.mxu0 %vm625_vm4, %v585_v55 }
  0xe2   : > { %1120 = vmatmul.msk.bf16.gmra.mxu1 %vm625_vm4, %v585_v55 }
  0xe9   : > { %1146 = vmatmul.msk.bf16.gmra.mxu2 %vm625_vm4, %v589_v61 }
  0xea   : > { %1100 = vmatmul.msk.bf16.gmra.mxu0 %vm625_vm4, %v587_v58 }
  0xf2   : > { %1121 = vmatmul.msk.bf16.gmra.mxu1 %vm625_vm4, %v587_v58 }
  0xf9   : > { %1147 = vmatmul.msk.bf16.gmra.mxu2 %vm625_vm4, %v591_v1 }
  0xfa   : > { %1101 = vmatmul.msk.bf16.gmra.mxu0 %vm625_vm4, %v589_v61 }
 0x102   : > { %1122 = vmatmul.msk.bf16.gmra.mxu1 %vm625_vm4, %v589_v61 }
 0x109   : > { %1148 = vmatmul.msk.bf16.gmra.mxu2 %vm625_vm4, %v593_v6 }
 0x10a   : > { %1102 = vmatmul.msk.bf16.gmra.mxu0 %vm625_vm4, %v591_v1 }
 0x10f   : > { %v720_v41 = vpop.f32.mrf.mxu1 }
 0x117   : > { %v651_v7 = vpop.f32.mrf.mxu0  ;;  %v722_v8 = vpop.f32.mrf.mxu1 }
 0x118   : > { %v721_v9 = vadd.f32 %v720_v41, %v651_v7 }
 0x11c   : > { %v796_v12 = vpop.f32.mrf.mxu2 }
 0x11d   : > { %v836_v13 = vadd.f32 %v796_v12, %v721_v9 }
 0x11f   : > { %v653_v14 = vpop.f32.mrf.mxu0  ;;  %v725_v15 = vpop.f32.mrf.mxu1  ;;  %v856_v18 = vadd.f32 %v1527_v16, %v836_v13 }
 0x120   : > { %v723_v10 = vadd.f32 %v722_v8, %v653_v14 }
 0x121   : > { %v872_v24 = vmax.f32 %v856_v18, 0.0 }
 0x124   : > { %v798_v17 = vpop.f32.mrf.mxu2 }
 0x125   : > { %v837_v19 = vadd.f32 %v798_v17, %v723_v10 }
 0x127   : > { %v857_v20 = vadd.f32 %v1527_v16, %v837_v19  ;;  %v656_v21 = vpop.f32.mrf.mxu0  ;;  %v727_v22 = vpop.f32.mrf.mxu1 }
 0x128   : > { %v726_v26 = vadd.f32 %v725_v15, %v656_v21 }
 0x129   : > { %v873_v25 = vmax.f32 %v857_v20, 0.0 }
 0x12b   : > { %v1531_v27 = vpack.c.bf16 %v873_v25, %v872_v24 }
 0x12c   : > { %v801_v28 = vpop.f32.mrf.mxu2 }
 0x12d   : > { %v838_v29 = vadd.f32 %v801_v28, %v726_v26 }
 0x12f   : > { %v658_v31 = vpop.f32.mrf.mxu0  ;;  %v730_v32 = vpop.f32.mrf.mxu1  ;;  %v858_v35 = vadd.f32 %v1527_v16, %v838_v29 }
 0x130   : > { %v728_v33 = vadd.f32 %v727_v22, %v658_v31 }
 0x131   : > { %v874_v40 = vmax.f32 %v858_v35, 0.0 }
 0x134   : > { %v803_v34 = vpop.f32.mrf.mxu2 }
 0x135   : > { %v839_v36 = vadd.f32 %v803_v34, %v728_v33 }
 0x137   : > { %v859_v37 = vadd.f32 %v1527_v16, %v839_v36  ;;  %v661_v38 = vpop.f32.mrf.mxu0  ;;  %v732_v39 = vpop.f32.mrf.mxu1 }
 0x138   : > { %v731_v44 = vadd.f32 %v730_v32, %v661_v38 }
 0x139   : > { %v875_v42 = vmax.f32 %v859_v37, 0.0 }
 0x13b   : > { %v1535_v45 = vpack.c.bf16 %v875_v42, %v874_v40 }
 0x13c   : > { %v806_v46 = vpop.f32.mrf.mxu2 }
 0x13d   : > { %v840_v2 = vadd.f32 %v806_v46, %v731_v44 }
 0x13f   : > { %v663_v0 = vpop.f32.mrf.mxu0  ;;  %v735_v47 = vpop.f32.mrf.mxu1  ;;  %v860_v49 = vadd.f32 %v1527_v16, %v840_v2 }
 0x140   : > { %v733_v48 = vadd.f32 %v732_v39, %v663_v0 }
 0x141   : > { %v876_v53 = vmax.f32 %v860_v49, 0.0 }
 0x144   : > { %v808_v5 = vpop.f32.mrf.mxu2 }
 0x145   : > { %v841_v50 = vadd.f32 %v808_v5, %v733_v48 }
 0x147   : > { %v861_v51 = vadd.f32 %v1527_v16, %v841_v50  ;;  %v666_v23 = vpop.f32.mrf.mxu0  ;;  %v737_v52 = vpop.f32.mrf.mxu1 }
 0x148   : > { %v736_v43 = vadd.f32 %v735_v47, %v666_v23 }
 0x149   : > { %v877_v55 = vmax.f32 %v861_v51, 0.0 }
 0x14b   : > { %v1539_v56 = vpack.c.bf16 %v877_v55, %v876_v53 }
 0x14c   : > { %v811_v57 = vpop.f32.mrf.mxu2 }
 0x14d   : > { %v842_v58 = vadd.f32 %v811_v57, %v736_v43 }
 0x14f   : > { %v668_v54 = vpop.f32.mrf.mxu0  ;;  %v740_v59 = vpop.f32.mrf.mxu1  ;;  %v862_v11 = vadd.f32 %v1527_v16, %v842_v58 }
 0x150   : > { %v738_v60 = vadd.f32 %v737_v52, %v668_v54 }
 0x151   : > { %v878_v3 = vmax.f32 %v862_v11, 0.0 }
 0x154   : > { %v813_v61 = vpop.f32.mrf.mxu2 }
 0x155   : > { %v843_v62 = vadd.f32 %v813_v61, %v738_v60 }
 0x157   : > { %v863_v63 = vadd.f32 %v1527_v16, %v843_v62  ;;  %v671_v1 = vpop.f32.mrf.mxu0  ;;  %v742_v30 = vpop.f32.mrf.mxu1 }
 0x158   : > { %v741_v6 = vadd.f32 %v740_v59, %v671_v1 }
 0x159   : > { %v879_v4 = vmax.f32 %v863_v63, 0.0 }
 0x15b   : > { %v1543_v41 = vpack.c.bf16 %v879_v4, %v878_v3 }
 0x15c   : > { %v816_v7 = vpop.f32.mrf.mxu2 }
 0x15d   : > { %v844_v8 = vadd.f32 %v816_v7, %v741_v6 }
 0x15f   : > { %v673_v9 = vpop.f32.mrf.mxu0  ;;  %v745_v12 = vpop.f32.mrf.mxu1  ;;  %v864_v15 = vadd.f32 %v1527_v16, %v844_v8  ;;  %v916_v8 = vsel %vm573_vm3, %v1543_v41, 0  ;;  %v907_v41 = vsel %vm573_vm3, %v1531_v27, 0 }
 0x160   : > { %v743_v13 = vadd.f32 %v742_v30, %v673_v9  ;;  %v1261_v9 = vmov 0  }
 0x161   : > { %v880_v19 = vmax.f32 %v864_v15, 0.0  ;;  %1216 = vset.pattern.permute.xlu2 %v1261_v9  ;;  %1217 = vset.pattern.permute.xlu0 %v1261_v9 }
 0x164   : > { %v818_v14 = vpop.f32.mrf.mxu2 }
 0x165   : > { %v845_v10 = vadd.f32 %v818_v14, %v743_v13  ;;  %v910_v13 = vsel %vm573_vm3, %v1535_v45, 0  ;;  %v888_v14 = vld [vmem:[%s1596_s3] sm:$0xf] }
 0x167   : > { %v865_v17 = vadd.f32 %v1527_v16, %v845_v10  ;;  %v676_v18 = vpop.f32.mrf.mxu0  ;;  %v747_v21 = vpop.f32.mrf.mxu1 }
 0x168   : > { %v746_v57 = vadd.f32 %v745_v12, %v676_v18  ;;  %v913_v12 = vsel %vm573_vm3, %v1539_v56, 0 }
 0x169   : > { %v881_v20 = vmax.f32 %v865_v17, 0.0 }
 0x16b   : > { %v893_v22 = vpack.c.bf16 %v881_v20, %v880_v19 }
 0x16c   : > { %v821_v24 = vpop.f32.mrf.mxu2 }
 0x16d   : > { %v846_v60 = vadd.f32 %v821_v24, %v746_v57  ;;  %v919_v7 = vsel %vm573_vm3, %v893_v22, 0 }
 0x16f   : > { %v678_v25 = vpop.f32.mrf.mxu0  ;;  %v750_v26 = vpop.f32.mrf.mxu1  ;;  %v866_v63 = vadd.f32 %v1527_v16, %v846_v60 }
 0x170   : > { %v748_v53 = vadd.f32 %v747_v21, %v678_v25 }
 0x171   : > { %v882_v3 = vmax.f32 %v866_v63, 0.0 }
 0x174   : > { %v823_v28 = vpop.f32.mrf.mxu2 }
 0x175   : > { %v847_v58 = vadd.f32 %v823_v28, %v748_v53 }
 0x177   : > { %v681_v29 = vpop.f32.mrf.mxu0  ;;  %v752_v32 = vpop.f32.mrf.mxu1  ;;  %v867_v11 = vadd.f32 %v1527_v16, %v847_v58 }
 0x178   : > { %v751_v0 = vadd.f32 %v750_v26, %v681_v29 }
 0x179   : > { %v883_v1 = vmax.f32 %v867_v11, 0.0 }
 0x17b   : > { %v894_v4 = vpack.c.bf16 %v883_v1, %v882_v3 }
 0x17c   : > { %v826_v31 = vpop.f32.mrf.mxu2 }
 0x17d   : > { %v848_v49 = vadd.f32 %v826_v31, %v751_v0  ;;  %v922_v6 = vsel %vm573_vm3, %v894_v4, 0 }
 0x17f   : > { %v683_v33 = vpop.f32.mrf.mxu0  ;;  %v755_v35 = vpop.f32.mrf.mxu1  ;;  %v868_v55 = vadd.f32 %v1527_v16, %v848_v49 }
 0x180   : > { %v753_v44 = vadd.f32 %v752_v32, %v683_v33 }
 0x181   : > { %v884_v61 = vmax.f32 %v868_v55, 0.0 }
 0x184   : > { %v828_v34 = vpop.f32.mrf.mxu2 }
 0x185   : > { %v849_v47 = vadd.f32 %v828_v34, %v753_v44 }
 0x187   : > { %v686_v36 = vpop.f32.mrf.mxu0  ;;  %v757_v42 = vpop.f32.mrf.mxu1  ;;  %v869_v51 = vadd.f32 %v1527_v16, %v849_v47 }
 0x188   : > { %v756_v38 = vadd.f32 %v755_v35, %v686_v36 }
 0x189   : > { %v885_v54 = vmax.f32 %v869_v51, 0.0 }
 0x18b   : > { %v895_v62 = vpack.c.bf16 %v885_v54, %v884_v61 }
 0x18c   : > { %v831_v37 = vpop.f32.mrf.mxu2 }
 0x18d   : > { %v850_v40 = vadd.f32 %v831_v37, %v756_v38  ;;  %v925_v30 = vsel %vm573_vm3, %v895_v62, 0 }
 0x18f   : > { %v688_v39 = vpop.f32.mrf.mxu0  ;;  %v870_v48 = vadd.f32 %v1527_v16, %v850_v40 }
 0x190   : > { %v758_v46 = vadd.f32 %v757_v42, %v688_v39 }
 0x191   : > { %v886_v23 = vmax.f32 %v870_v48, 0.0 }
 0x194   : > { %v833_v2 = vpop.f32.mrf.mxu2 }
 0x195   : > { %v851_v5 = vadd.f32 %v833_v2, %v758_v46 }
 0x197   : > { %v871_v50 = vadd.f32 %v1527_v16, %v851_v5  ;;  %v897_v16 = vld [vmem:[%s1597_s4] sm:$0xff] }
 0x198   : > { %900 = vperm.xlu2 %1216, %v897_v16  }
 0x199   : > { %v887_v52 = vmax.f32 %v871_v50, 0.0 }
 0x19b   : > { %v896_v43 = vpack.c.bf16 %v887_v52, %v886_v23 }
 0x19d   : > { %v928_v59 = vsel %vm573_vm3, %v896_v43, 0 }
 0x19e   : > { %930 = vmatpush.bf16.xpose.msra.mxu3 %v928_v59 }
 0x1a6   : > { %931 = vmatpush.bf16.xpose.msra.mxu3 %v925_v30 }
 0x1ae   : > { %932 = vmatpush.bf16.xpose.msra.mxu3 %v922_v6 }
 0x1b6   : > { %933 = vmatpush.bf16.xpose.msra.mxu3 %v919_v7 }
 0x1be   : > { %934 = vmatpush.bf16.xpose.msra.mxu3 %v916_v8 }
 0x1c6   : > { %935 = vmatpush.bf16.xpose.msra.mxu3 %v913_v12 }
 0x1ce   : > { %936 = vmatpush.bf16.xpose.msra.mxu3 %v910_v13 }
 0x1d6   : > { %937 = vmatpush.bf16.xpose.msra.mxu3 %v907_v41 }
 0x1dd   : > { %1149 = vmatmul.msk.bf16.vlgmr.msra.gmra.mxu3 %vm573_vm3, %v888_v14 }
 0x1f2   : > { %v901_v56 = vpop.permute.xlu2 %900 }
 0x260   : > { %v939_v45 = vpop.f32.mrf.mxu3 }
 0x261   : > { %v940_v15 = vadd.f32 %v939_v45, %v901_v56 }
 0x263   : > { %943 = vst [vmem:[%s244_s26] sm:$0xff] %v940_v15 }
 0x268   : > { %v941_v27 = vpop.f32.mrf.mxu3 }
 0x269 PF: > { %s15_s22 = sadd.s32 1, %s1257_s22   ;;  %s1599_s18 = smov %s1249_s20 }
 0x26a   : > { %p12_p7 = scmp.ge.s32.totalorder %s15_s22, 6   ;;  %s1600_s19 = smov %s1253_s21 }
 0x26b   : > { %s1601_s20 = smov %s1604_s23  ;;  %s1602_s21 = smov %s1608_s24 }
 0x26c   :  { %14 = sbr.rel (!%p12_p7) target bundleno = 3 (0x3), region = 73 }

</bundles_post_ra>
